<compile_context>
chip_gen: v7x
topology: tpu7x:2x2x1
jax: 0.10.0
libtpu: 0.0.40
codegen_flags: <defaults>
</compile_context>

<pallas_src>
import jax
import jax.numpy as jnp
from jax.experimental import pallas as pl
from jax.experimental.pallas import tpu as pltpu

OUT_HW = 224     # F.interpolate(..., size=[224, 224])
N_SLICES = 2     # input.chunk(2, dim=1)
OUT_SZ = 8       # epix_model.out_size (synthetic)
VOX = OUT_SZ ** 3


def _cdiv(a, b):
    return -(-a // b)


# ---------------------------------------------------------------------------
# Fused kernel: fg-sum -> weighted GAP (== GAP of nearest-upsample * 255)
#               -> linear head (bias pre-scaled by epx) -> sigmoid
#               -> [1 - y | y] slice stores
# ---------------------------------------------------------------------------
def fused_kernel(inp_ref, wmap_ref, w2_ref, b_ref, out_ref):
    x = inp_ref[0]                                       # (TB, C, HW)
    wmap = wmap_ref[...]                                  # (1, HW)
    C = x.shape[1]
    C2 = C // N_SLICES

    # foreground sum of each chunk: slc[:, 1:].sum(dim=1)   (lane-dense HW axis)
    fg0 = jnp.sum(x[:, 1:C2, :], axis=1)                  # (TB, HW)
    fg1 = jnp.sum(x[:, C2 + 1:, :], axis=1)               # (TB, HW)

    # weighted reduction == GAP(nearest_upsample(fg)) * 255   (VPU + XLU)
    f0 = jnp.sum(fg0 * wmap, axis=-1, keepdims=True)       # (TB, 1)
    f1 = jnp.sum(fg1 * wmap, axis=-1, keepdims=True)       # (TB, 1)

    # linear head; 3x RGB replication folded into w2, epx folded into b
    logits = f0 * w2_ref[0:1, :] + f1 * w2_ref[1:2, :] + b_ref[...]  # (TB, VOX)
    y = jax.nn.sigmoid(logits)                             # (TB, VOX)

    # lane-dense halves (each a multiple of 128 lanes), no concat intermediate
    out_ref[0, :, 0:VOX] = 1.0 - y
    out_ref[0, :, VOX:2 * VOX] = y


# ---------------------------------------------------------------------------
# Wrapper
# ---------------------------------------------------------------------------
@jax.jit
def epix2vox_interface(inp, epx, w, b):
    B, C, H, W = inp.shape
    HW = H * W

    # nearest-neighbor replication counts -> weighted-GAP map (tiny XLA glue)
    h_idx = (jnp.arange(OUT_HW) * H) // OUT_HW
    w_idx = (jnp.arange(OUT_HW) * W) // OUT_HW
    rh = jnp.sum(jax.nn.one_hot(h_idx, H, dtype=jnp.float32), axis=0)   # (H,)
    rw = jnp.sum(jax.nn.one_hot(w_idx, W, dtype=jnp.float32), axis=0)   # (W,)
    wmap = ((rh[:, None] * rw[None, :])
            * (255.0 / (OUT_HW * OUT_HW))).reshape(1, HW)               # (1, HW)

    # fold the 3 identical RGB channels per slice into the head weights,
    # fold epx into the bias (loop-invariant; do it once outside the kernel)
    w2 = jnp.sum(w.reshape(N_SLICES, 3, VOX), axis=1)                   # (2, VOX)
    b_scaled = (epx[0] * b).reshape(1, VOX)                             # (1, VOX)

    # --- batch tiling (mem-bound kernel; big tiles, few steps) -------------
    item_bytes = C * HW * 4
    vmem_in_budget = 12 * 1024 * 1024          # double-buffered input, v7x-safe
    tb_cap = max(1, vmem_in_budget // (2 * item_bytes))
    num_steps = _cdiv(B, tb_cap)
    if B >= 2:
        num_steps = max(num_steps, 2)          # keep both v7x TCs busy
    tb = _cdiv(B, num_steps)
    num_steps = _cdiv(B, tb)
    b_pad = num_steps * tb

    inp_flat = inp.reshape(B, C, HW)           # free, contiguous reshape
    if b_pad != B:
        inp_flat = jnp.pad(inp_flat, ((0, b_pad - B), (0, 0), (0, 0)))
    inp_tiled = inp_flat.reshape(num_steps, tb, C, HW)

    cost = pl.CostEstimate(
        flops=int(b_pad * (C * HW + 4 * HW + 4 * VOX)),
        transcendentals=int(b_pad * VOX),
        bytes_accessed=int(4 * (b_pad * C * HW + HW + (N_SLICES + 1) * VOX
                                + b_pad * 2 * VOX)),
    )

    out = pl.pallas_call(
        fused_kernel,
        out_shape=jax.ShapeDtypeStruct((num_steps, tb, 2 * VOX), jnp.float32),
        grid_spec=pltpu.PrefetchScalarGridSpec(
            num_scalar_prefetch=0,
            grid=(num_steps,),
            in_specs=[
                pl.BlockSpec((1, tb, C, HW), lambda i: (i, 0, 0, 0)),   # input
                pl.BlockSpec((1, HW), lambda i: (0, 0)),                # wmap
                pl.BlockSpec((N_SLICES, VOX), lambda i: (0, 0)),        # w2
                pl.BlockSpec((1, VOX), lambda i: (0, 0)),               # bias*epx
            ],
            out_specs=pl.BlockSpec((1, tb, 2 * VOX), lambda i: (i, 0, 0)),
        ),
        compiler_params=pltpu.CompilerParams(
            dimension_semantics=("parallel",),
            vmem_limit_bytes=32 * 1024 * 1024,
        ),
        cost_estimate=cost,
    )(inp_tiled, wmap, w2, b_scaled)

    # (num_steps, TB, 2*VOX) -> (B, 2, out_sz, out_sz, out_sz)
    return (out.reshape(b_pad, 2 * VOX)[:B]
            .reshape(B, 2, OUT_SZ, OUT_SZ, OUT_SZ))


# ---------------------------------------------------------------------------
# Pure-JAX reference (mirrors the PyTorch forward + synthetic epix_model,
# including the full upsample / 3x replicate / *255 / GAP path)
# ---------------------------------------------------------------------------
def reference(inp, epx, w, b):
    B, C, H, W = inp.shape
    C2 = C // N_SLICES
    chunks = [inp[:, :C2], inp[:, C2:]]
    slice_fg = [jnp.sum(ch[:, 1:], axis=1, keepdims=True) for ch in chunks]
    slices = jnp.concatenate(slice_fg, axis=1)                       # (B,2,H,W)
    h_idx = (jnp.arange(OUT_HW) * H) // OUT_HW
    w_idx = (jnp.arange(OUT_HW) * W) // OUT_HW
    slices = slices[:, :, h_idx][:, :, :, w_idx]                     # (B,2,224,224)
    slices = jnp.repeat(slices[:, :, None], 3, axis=2) * 255.0       # (B,2,3,224,224)
    feat = jnp.mean(slices, axis=(-2, -1)).reshape(B, N_SLICES * 3)  # (B,6)
    logits = feat @ w + epx[0] * b                                   # (B,VOX)
    y = jax.nn.sigmoid(logits).reshape(B, 1, OUT_SZ, OUT_SZ, OUT_SZ)
    return jnp.concatenate([1.0 - y, y], axis=1)


if __name__ == "__main__":
    key = jax.random.PRNGKey(0)
    k_in, k_w, k_b = jax.random.split(key, 3)

    # small shapes consistent with the forward pass
    B, C, H, W = 2, 4, 16, 16
    x = jax.random.uniform(k_in, (B, C, H, W), dtype=jnp.float32)
    epx = jnp.array([5.0], dtype=jnp.float32)

    # deterministic synthetic epix_model parameters
    w_param = (jax.random.normal(k_w, (N_SLICES * 3, VOX), dtype=jnp.float32)
               * 1e-3)
    b_param = (jax.random.normal(k_b, (1, VOX), dtype=jnp.float32) * 1e-1)

    out = epix2vox_interface(x, epx, w_param, b_param)
    out = jax.block_until_ready(out)

    ref = reference(x, epx, w_param, b_param)
    assert out.shape == (B, 2, OUT_SZ, OUT_SZ, OUT_SZ), out.shape
    assert jnp.allclose(out, ref, atol=1e-3, rtol=1e-3), (
        float(jnp.max(jnp.abs(out - ref))))

    print("KERNEL_OK")
</pallas_src>

<mosaic_0001>
module attributes {stable_mosaic.version = 11 : i64} {
  func.func @fused_kernel(%arg0: i32, %arg1: memref<1x1x4x256xf32, #tpu.memory_space<vmem>>, %arg2: memref<1x256xf32, #tpu.memory_space<vmem>>, %arg3: memref<2x512xf32, #tpu.memory_space<vmem>>, %arg4: memref<1x512xf32, #tpu.memory_space<vmem>>, %arg5: memref<1x1x1024xf32, #tpu.memory_space<vmem>>) attributes {dimension_semantics = [#tpu.dimension_semantics<parallel>], iteration_bounds = array<i64: 2>, scalar_prefetch = 0 : i64, scratch_operands = 0 : i64, tpu.core_type = #tpu.core_type<tc>, window_params = [{transform_indices = @transform_0, window_bounds = array<i64: 1, 1, 4, 256>}, {pipeline_mode = #tpu.pipeline_mode<synchronous>, transform_indices = @transform_1, window_bounds = array<i64: 1, 256>}, {pipeline_mode = #tpu.pipeline_mode<synchronous>, transform_indices = @transform_2, window_bounds = array<i64: 2, 512>}, {pipeline_mode = #tpu.pipeline_mode<synchronous>, transform_indices = @transform_3, window_bounds = array<i64: 1, 512>}, {transform_indices = @transform_4, window_bounds = array<i64: 1, 1, 1024>}]} {
    %c0 = arith.constant 0 : index
    %c0_0 = arith.constant 0 : index
    %c0_1 = arith.constant 0 : index
    %c0_2 = arith.constant 0 : index
    %0 = vector.load %arg1[%c0, %c0_0, %c0_1, %c0_2] : memref<1x1x4x256xf32, #tpu.memory_space<vmem>>, vector<1x1x4x256xf32>
    %1 = vector.shape_cast %0 : vector<1x1x4x256xf32> to vector<1x4x256xf32>
    %c0_3 = arith.constant 0 : index
    %c0_4 = arith.constant 0 : index
    %2 = vector.load %arg2[%c0_3, %c0_4] : memref<1x256xf32, #tpu.memory_space<vmem>>, vector<1x256xf32>
    %3 = vector.extract_strided_slice %1 {offsets = [0, 1, 0], sizes = [1, 1, 256], strides = [1, 1, 1]} : vector<1x4x256xf32> to vector<1x1x256xf32>
    %cst = arith.constant dense<0.000000e+00> : vector<1x256xf32>
    %4 = vector.multi_reduction <add>, %3, %cst [1] : vector<1x1x256xf32> to vector<1x256xf32>
    %5 = vector.extract_strided_slice %1 {offsets = [0, 3, 0], sizes = [1, 1, 256], strides = [1, 1, 1]} : vector<1x4x256xf32> to vector<1x1x256xf32>
    %cst_5 = arith.constant dense<0.000000e+00> : vector<1x256xf32>
    %6 = vector.multi_reduction <add>, %5, %cst_5 [1] : vector<1x1x256xf32> to vector<1x256xf32>
    %7 = arith.mulf %4, %2 : vector<1x256xf32>
    %cst_6 = arith.constant dense<0.000000e+00> : vector<1xf32>
    %8 = vector.multi_reduction <add>, %7, %cst_6 [1] : vector<1x256xf32> to vector<1xf32>
    %9 = vector.shape_cast %8 : vector<1xf32> to vector<1x1xf32>
    %10 = arith.mulf %6, %2 : vector<1x256xf32>
    %cst_7 = arith.constant dense<0.000000e+00> : vector<1xf32>
    %11 = vector.multi_reduction <add>, %10, %cst_7 [1] : vector<1x256xf32> to vector<1xf32>
    %12 = vector.shape_cast %11 : vector<1xf32> to vector<1x1xf32>
    %c0_8 = arith.constant 0 : index
    %c0_9 = arith.constant 0 : index
    %13 = vector.load %arg3[%c0_8, %c0_9] : memref<2x512xf32, #tpu.memory_space<vmem>>, vector<1x512xf32>
    %14 = vector.broadcast %9 : vector<1x1xf32> to vector<1x512xf32>
    %15 = arith.mulf %14, %13 : vector<1x512xf32>
    %c1 = arith.constant 1 : index
    %c0_10 = arith.constant 0 : index
    %16 = vector.load %arg3[%c1, %c0_10] : memref<2x512xf32, #tpu.memory_space<vmem>>, vector<1x512xf32>
    %17 = vector.broadcast %12 : vector<1x1xf32> to vector<1x512xf32>
    %18 = arith.mulf %17, %16 : vector<1x512xf32>
    %19 = arith.addf %15, %18 : vector<1x512xf32>
    %c0_11 = arith.constant 0 : index
    %c0_12 = arith.constant 0 : index
    %20 = vector.load %arg4[%c0_11, %c0_12] : memref<1x512xf32, #tpu.memory_space<vmem>>, vector<1x512xf32>
    %21 = arith.addf %19, %20 : vector<1x512xf32>
    %22 = arith.negf %21 : vector<1x512xf32>
    %23 = math.exp %22 : vector<1x512xf32>
    %cst_13 = arith.constant 1.000000e+00 : f32
    %24 = vector.broadcast %cst_13 : f32 to vector<1x512xf32>
    %25 = arith.addf %24, %23 : vector<1x512xf32>
    %26 = arith.divf %24, %25 : vector<1x512xf32>
    %cst_14 = arith.constant 1.000000e+00 : f32
    %27 = vector.broadcast %cst_14 : f32 to vector<1x512xf32>
    %28 = arith.subf %27, %26 : vector<1x512xf32>
    %c0_15 = arith.constant 0 : index
    %c0_16 = arith.constant 0 : index
    %c0_17 = arith.constant 0 : index
    %29 = vector.load %arg5[%c0_15, %c0_16, %c0_17] : memref<1x1x1024xf32, #tpu.memory_space<vmem>>, vector<1x1x512xf32>
    %30 = vector.shape_cast %29 : vector<1x1x512xf32> to vector<1x512xf32>
    %31 = vector.shape_cast %28 : vector<1x512xf32> to vector<1x1x512xf32>
    tpu.vector_store %arg5[%c0_15, %c0_16, %c0_17], %31 {strides = array<i32>} : memref<1x1x1024xf32, #tpu.memory_space<vmem>>, vector<1x1x512xf32>,
    %c0_18 = arith.constant 0 : index
    %c0_19 = arith.constant 0 : index
    %c512 = arith.constant 512 : index
    %32 = vector.load %arg5[%c0_18, %c0_19, %c512] : memref<1x1x1024xf32, #tpu.memory_space<vmem>>, vector<1x1x512xf32>
    %33 = vector.shape_cast %32 : vector<1x1x512xf32> to vector<1x512xf32>
    %34 = vector.shape_cast %26 : vector<1x512xf32> to vector<1x1x512xf32>
    tpu.vector_store %arg5[%c0_18, %c0_19, %c512], %34 {strides = array<i32>} : memref<1x1x1024xf32, #tpu.memory_space<vmem>>, vector<1x1x512xf32>,
    return
  }
  func.func @transform_0(%arg0: i32) -> (i32, i32, i32, i32) {
    %c0_i32 = arith.constant 0 : i32
    %c0_i32_0 = arith.constant 0 : i32
    %c0_i32_1 = arith.constant 0 : i32
    %c0_i32_2 = arith.constant 0 : i32
    return %arg0, %c0_i32, %c0_i32_0, %c0_i32_1 : i32, i32, i32, i32
  }
  func.func @transform_1(%arg0: i32) -> (i32, i32) {
    %c0_i32 = arith.constant 0 : i32
    %c0_i32_0 = arith.constant 0 : i32
    %c0_i32_1 = arith.constant 0 : i32
    return %c0_i32, %c0_i32_0 : i32, i32
  }
  func.func @transform_2(%arg0: i32) -> (i32, i32) {
    %c0_i32 = arith.constant 0 : i32
    %c0_i32_0 = arith.constant 0 : i32
    %c0_i32_1 = arith.constant 0 : i32
    return %c0_i32, %c0_i32_0 : i32, i32
  }
  func.func @transform_3(%arg0: i32) -> (i32, i32) {
    %c0_i32 = arith.constant 0 : i32
    %c0_i32_0 = arith.constant 0 : i32
    %c0_i32_1 = arith.constant 0 : i32
    return %c0_i32, %c0_i32_0 : i32, i32
  }
  func.func @transform_4(%arg0: i32) -> (i32, i32, i32) {
    %c0_i32 = arith.constant 0 : i32
    %c0_i32_0 = arith.constant 0 : i32
    %c0_i32_1 = arith.constant 0 : i32
    return %arg0, %c0_i32, %c0_i32_0 : i32, i32, i32
  }
}

</mosaic_0001>

<bundles_post_ra>
// kernel: epix2vox_interface.1
= control target key start
LH: loop header
LB: loop body
LE: loop exit
PB: predicated region body
PF: predicated region fallthrough
CT: control target
= control target key end

     0   :  { %s559_s15 = smov 0   ;;  %s607_s0 = inlined_call_operand.vmem [shape: f32[2,1,4,256], index: 0, kind: input, shape index: {}]   ;;  %s608_s1 = inlined_call_operand.vmem [shape: f32[1,256], index: 1, kind: input, shape index: {}]   ;;  %s609_s2 = inlined_call_operand.vmem [shape: f32[2,512], index: 2, kind: input, shape index: {}]   ;;  %s610_s3 = inlined_call_operand.vmem [shape: f32[1,512], index: 3, kind: input, shape index: {}]   ;;  %s611_s4 = inlined_call_operand.vmem [shape: f32[2,1,1024], index: 4, kind: output, shape index: {}]  }
   0x1 LB: > { %s482_s16 = sadd.s32 4294967295, %s530_s15   ;;  %p486_p0 = scmp.ge.s32.totalorder %s530_s15, 1  ;;  %s530_s15 = sphi %s559_s15, %s14_s15  }
   0x2   : > { %p162_p1 = scmp.lt.s32.totalorder %s530_s15, 3 }
   0x4   : > { %p163_p2 = pnand %p486_p0, %p162_p1 }
   0x5   : > { %p187_p3 = scmp.lt.s32.totalorder (!%p163_p2), %s482_s16, 1  ;;  %v203_v0 = vlaneseq (!%p163_p2)  ;;  %v532_v1 = vmov (!%p163_p2), 286326784   ;;  %v197_v5 = vld [vmem:[%s608_s1] sm:$0x3] (!%p163_p2)  ;;  %vm236_vm0 = vcmask (!%p163_p2), 1043459   ;;  %vm220_vm1 = vcmask (!%p163_p2), 1041409  }
   0x6   : > { %166 = sbr.rel (%p163_p2) target bundleno = 216 (0xd8), region = 36  ;;  %v201_v2 = vunpack.c.l.s4 (!%p163_p2), %v532_v1  ;;  %v490_v26 = vld [vmem:[%s609_s2 + $0x1] ss:$2 sm:$0xf] (!%p163_p2) }
   0x7   : > { %v570_v3 = vshrl.u32 (!%p163_p2), %v203_v0, 7  ;;  %v242_v31 = vld [vmem:[%s609_s2] ss:$2 sm:$0xf] (!%p163_p2)  ;;  %vm396_vm2 = vcmp.lt.s32.totalorder (!%p163_p2), %v203_v0, 512 }
   0x8   : > { %v202_v4 = vunpack.c.0.s8 (!%p163_p2), %v201_v2  ;;  %v311_v37 = vld [vmem:[%s610_s3] sm:$0xf] (!%p163_p2) }
   0x9   : > { %v228_v8 = vsub.s32 (!%p163_p2), 3, %v570_v3  ;;  %v232_v10 = vsub.s32 (!%p163_p2), 7, %v570_v3  ;;  %v212_v11 = vsub.s32 (!%p163_p2), 1, %v570_v3  ;;  %v216_v12 = vsub.s32 (!%p163_p2), 5, %v570_v3 }
   0xa   : > { %v205_v6 = vsub.s32 (!%p163_p2), %v202_v4, %v570_v3  ;;  %v246_v24 = vsub.s32 (!%p163_p2), 0, %v570_v3  ;;  %v254_v25 = vsub.s32 (!%p163_p2), 2, %v570_v3 }
   0xb   : > { %v278_v28 = vrot.slane (!%p163_p2), %v490_v26, %v212_v11  ;;  %v286_v30 = vrot.slane (!%p163_p2), %v490_v26, %v228_v8  ;;  %v251_v34 = vrot.slane (!%p163_p2), %v242_v31, %v212_v11  ;;  %v259_v36 = vrot.slane (!%p163_p2), %v242_v31, %v228_v8 }
   0xc   : > { %v206_v9 = vrot.slane (!%p163_p2), %v197_v5, %v205_v6  ;;  %v274_v27 = vrot.slane (!%p163_p2), %v490_v26, %v246_v24  ;;  %v282_v29 = vrot.slane (!%p163_p2), %v490_v26, %v254_v25  ;;  %v247_v33 = vrot.slane (!%p163_p2), %v242_v31, %v246_v24 }
   0xd   : > { %s613_s16 = smov (!%p187_p3, %s482_s16), 1  ;;  %v255_v35 = vrot.slane %v242_v31, %v254_v25  ;;  %v316_v42 = vrot.slane %v311_v37, %v246_v24  ;;  %v320_v43 = vrot.slane %v311_v37, %v212_v11  ;;  %v324_v44 = vrot.slane %v311_v37, %v254_v25 }
   0xe   : > { %s497_s17 = sshll.u32 %s613_s16, 3  ;;  %v328_v45 = vrot.slane %v311_v37, %v228_v8 }
   0xf   : > { %s191_s22 = scalar_lea.vmem %s607_s0, %s497_s17  ;;  %s195_s5 = scalar_lea.vmem %s611_s4, %s497_s17 }
  0x10   : > { %v196_v7 = vld [vmem:[%s191_s22] sm:$0xff] }
  0x11   : > { %v208_v13 = vmul.f32 %v206_v9, %v196_v7 }
  0x13   : > { %v229_v14 = vrot.slane %v208_v13, %v228_v8  ;;  %v233_v15 = vrot.slane %v208_v13, %v232_v10  ;;  %v213_v16 = vrot.slane %v208_v13, %v212_v11  ;;  %v217_v17 = vrot.slane %v208_v13, %v216_v12 }
  0x14   : > { %v533_v13 = vmov 1966171168  }
  0x15   : > { %v237_v18 = vsel %vm236_vm0, %v229_v14, 0.0  ;;  %v238_v19 = vsel %vm236_vm0, %v233_v15, 0.0  ;;  %v221_v20 = vsel %vm220_vm1, %v213_v16, 0.0  ;;  %v222_v21 = vsel %vm220_vm1, %v217_v17, 0.0 }
  0x16   : > { %v239_v22 = vadd.f32 %v238_v19, %v237_v18  ;;  %v223_v23 = vadd.f32 %v222_v21, %v221_v20  ;;  %v372_v14 = vunpack.c.l.s4 %v533_v13 }
  0x18   : > { %240 = vadd.xlane.f32.xlu0 %v239_v22  ;;  %v373_v15 = vunpack.c.0.s8 %v372_v14 }
  0x1a   : > { %v376_v17 = vsub.s32 %v373_v15, %v570_v3 }
  0x1c   : > { %224 = vadd.xlane.f32.xlu0 %v223_v23 }
  0xa5   : > { %v241_v32 = vpop.xlane.xlu0 %240 }
  0xa6   : > { %v291_v38 = vmul.f32 %v274_v27, %v241_v32  ;;  %v292_v39 = vmul.f32 %v278_v28, %v241_v32  ;;  %v293_v40 = vmul.f32 %v282_v29, %v241_v32  ;;  %v294_v41 = vmul.f32 %v286_v30, %v241_v32 }
  0xa8   : > { %v299_v46 = vrot.slane %v291_v38, 2  ;;  %v300_v47 = vrot.slane %v292_v39, 2  ;;  %v301_v48 = vrot.slane %v293_v40, 2  ;;  %v302_v49 = vrot.slane %v294_v41, 2 }
  0xa9   : > { %v225_v50 = vpop.xlane.xlu0 %224 }
  0xaa   : > { %v264_v51 = vmul.f32 %v247_v33, %v225_v50  ;;  %v265_v52 = vmul.f32 %v251_v34, %v225_v50  ;;  %v266_v53 = vmul.f32 %v255_v35, %v225_v50  ;;  %v267_v54 = vmul.f32 %v259_v36, %v225_v50 }
  0xac   : > { %v307_v55 = vadd.f32 %v299_v46, %v264_v51  ;;  %v308_v56 = vadd.f32 %v300_v47, %v265_v52  ;;  %v309_v57 = vadd.f32 %v301_v48, %v266_v53  ;;  %v310_v58 = vadd.f32 %v302_v49, %v267_v54 }
  0xae   : > { %v333_v59 = vadd.f32 %v316_v42, %v307_v55  ;;  %v334_v60 = vadd.f32 %v320_v43, %v308_v56  ;;  %v335_v61 = vadd.f32 %v324_v44, %v309_v57  ;;  %v336_v62 = vadd.f32 %v328_v45, %v310_v58 }
  0xb0   : > { %v491_v63 = vmul.f32 -1.442695, %v333_v59  ;;  %v492_v1 = vmul.f32 -1.442695, %v334_v60  ;;  %v493_v2 = vmul.f32 -1.442695, %v335_v61 }
  0xb1   : > { %v494_v4 = vmul.f32 -1.442695, %v336_v62 }
  0xb2   : > { %508 = vpow2.f32 %v491_v63 }
  0xb3   : > { %510 = vpow2.f32 %v492_v1 }
  0xb4   : > { %512 = vpow2.f32 %v493_v2 }
  0xb5   : > { %514 = vpow2.f32 %v494_v4 }
  0xbc   : > { %v509_v5 = vpop.eup %508 }
  0xbd   : > { %v511_v6 = vpop.eup %510  ;;  %v349_v7 = vadd.f32 1.0, %v509_v5 }
  0xbe   : > { %v513_v8 = vpop.eup %512  ;;  %v350_v9 = vadd.f32 1.0, %v511_v6 }
  0xbf   : > { %v515_v10 = vpop.eup %514  ;;  %v351_v11 = vadd.f32 1.0, %v513_v8  ;;  %516 = vrcp.f32 %v349_v7 }
  0xc0   : > { %v352_v12 = vadd.f32 1.0, %v515_v10  ;;  %518 = vrcp.f32 %v350_v9 }
  0xc1   : > { %520 = vrcp.f32 %v351_v11 }
  0xc2   : > { %522 = vrcp.f32 %v352_v12 }
  0xc9   : > { %v517_v16 = vpop.eup %516 }
  0xca   : > { %v519_v18 = vpop.eup %518  ;;  %v361_v19 = vsub.f32 1.0, %v517_v16 }
  0xcb   : > { %v521_v20 = vpop.eup %520  ;;  %v362_v21 = vsub.f32 1.0, %v519_v18  ;;  %v403_v22 = vcombine.low %v517_v16, %v519_v18 }
  0xcc   : > { %v523_v23 = vpop.eup %522  ;;  %v363_v24 = vsub.f32 1.0, %v521_v20 }
  0xcd   : > { %v364_v25 = vsub.f32 1.0, %v523_v23  ;;  %v369_v26 = vcombine.low %v361_v19, %v362_v21  ;;  %v404_v27 = vcombine.low %v521_v20, %v523_v23  ;;  %v411_v28 = vrot.slane %v403_v22, %v376_v17 }
  0xcf   : > { %v370_v29 = vcombine.low %v363_v24, %v364_v25  ;;  %v377_v30 = vrot.slane %v369_v26, %v376_v17  ;;  %v418_v31 = vrot.slane %v404_v27, %v376_v17 }
  0xd1   : > { %v384_v32 = vrot.slane %v370_v29, %v376_v17  ;;  %v419_v33 = vcombine.high %v411_v28, %v418_v31 }
  0xd3   : > { %v385_v3 = vcombine.high %v377_v30, %v384_v32  ;;  %v426_v34 = vrot.slane %v419_v33, %v376_v17 }
  0xd5   : > { %v392_v35 = vrot.slane %v385_v3, %v376_v17  ;;  %428 = vst.msk [vmem:[%s195_s5 + $0x4] sm:$0xf] %vm396_vm2, %v426_v34 }
  0xd7   : > { %398 = vst.msk [vmem:[%s195_s5] sm:$0xf] %vm396_vm2, %v392_v35 }
  0xd8 PF: > { %s14_s15 = sadd.s32 1, %s530_s15  }
  0xd9   : > { %p11_p4 = scmp.ge.s32.totalorder %s14_s15, 4  }
  0xdb   :  { %13 = sbr.rel (!%p11_p4) target bundleno = 1 (0x1), region = 67 }

</bundles_post_ra>
